<compile_context>
chip_gen: v7x
topology: tpu7x:2x2x1
jax: 0.10.0
libtpu: 0.0.40
codegen_flags: <defaults>
</compile_context>

<pallas_src>
import jax
import jax.numpy as jnp
from jax.experimental import pallas as pl
from jax.experimental.pallas import tpu as pltpu


def hiagm_la_kernel(text_ref, w_ref, bias_ref, logits_ref):
    # text_ref:   (B_tile, K, D)   token features for this batch tile
    # w_ref:      (D, N_pad)       folded linear weight (zero-padded on lanes)
    # bias_ref:   (1, N_pad)       zero-padded bias
    # logits_ref: (B_tile, N_pad)  lane-dense output slab
    k = text_ref.shape[1]
    # mean over tokens: sublane reduce + scalar scale (identical to jnp.mean)
    tf = text_ref[...].sum(axis=1) * (1.0 / k)                  # (B_tile, D) f32
    logits_ref[...] = (
        jnp.dot(tf, w_ref[...], preferred_element_type=jnp.float32)
        + bias_ref[...]
    ).astype(logits_ref.dtype)


def prepare_params(linear_w, linear_b, n_labels, dim):
    """One-time weight fold (do at model init, NOT per forward call).

    linear_w: (N_out, N*D) PyTorch nn.Linear weight layout.
    Because the length-1 softmax weights are identically 1, the flatten+Linear
    is equivalent to contracting text_mean (B, D) against
        W_sum[d, o] = sum_n linear_w[o, n*D + d]
    W_sum and bias are zero-padded on the output axis to a multiple of 128 so
    the kernel's store is an unmasked, lane-dense vst.
    """
    n_out = linear_w.shape[0]
    n_pad = pl.cdiv(n_out, 128) * 128
    w_sum = jnp.transpose(linear_w).reshape(n_labels, dim, n_out).sum(axis=0)  # (D, N_out)
    w_pad = jnp.zeros((dim, n_pad), linear_w.dtype).at[:, :n_out].set(w_sum)
    b_pad = jnp.zeros((1, n_pad), linear_b.dtype).at[:, :n_out].set(linear_b)
    return w_pad, b_pad


def hiagm_la_forward(text_feature, label_emb, w_pad, b_pad, n_out, *, b_tile=8):
    """
    text_feature: (B, K, D) float32
    label_emb:    (N, D)    float32  (label embedding table; returned as label_feature)
    w_pad:        (D, N_pad) float32 pre-folded weight from prepare_params
    b_pad:        (1, N_pad) float32 pre-padded bias
    returns (label_feature (N, D), logits (B, n_out))
    """
    B, K, D = text_feature.shape
    n_pad = w_pad.shape[1]
    b_tile = min(b_tile, B)
    grid = (pl.cdiv(B, b_tile),)

    logits_pad = pl.pallas_call(
        hiagm_la_kernel,
        out_shape=jax.ShapeDtypeStruct((B, n_pad), jnp.float32),
        grid=grid,
        in_specs=[
            pl.BlockSpec((b_tile, K, D), lambda i: (i, 0, 0)),   # batch-tiled text
            pl.BlockSpec((D, n_pad), lambda i: (0, 0)),          # resident folded weight
            pl.BlockSpec((1, n_pad), lambda i: (0, 0)),          # resident bias
        ],
        out_specs=pl.BlockSpec((b_tile, n_pad), lambda i: (i, 0)),
        compiler_params=pltpu.CompilerParams(
            dimension_semantics=("parallel",)),                  # megacore over batch
    )(text_feature, w_pad, b_pad)

    # TODO(synk): nn.Dropout is stochastic only in train(); eval (identity)
    # semantics are used here.
    return label_emb, logits_pad[:, :n_out]


def ref_forward(text_feature, label_emb, linear_w, linear_b):
    """Plain-JAX reference mirroring the PyTorch forward exactly."""
    tf = jnp.mean(text_feature, axis=1, keepdims=True)           # (B, 1, D)
    att = jnp.einsum('bkd,nd->bkn', tf, label_emb)               # (B, 1, N)
    att_t = jnp.swapaxes(att, 1, 2)                              # (B, N, 1)
    w = jax.nn.softmax(att_t, axis=-1)                           # (B, N, 1) == 1.0
    label_align = jnp.einsum('bnk,bkd->bnd', w, tf)              # (B, N, D)
    flat = label_align.reshape(label_align.shape[0], -1)         # (B, N*D)
    logits = flat @ linear_w.T + linear_b                        # (B, N)
    return label_emb, logits


if __name__ == "__main__":
    # batch, tokens (K0), text/label dim, num labels
    B, K, D, N = 16, 8, 32, 16

    key = jax.random.PRNGKey(0)
    k1, k2, k3, k4 = jax.random.split(key, 4)
    text_feature = jax.random.normal(k1, (B, K, D), dtype=jnp.float32)
    label_emb = 0.1 * jax.random.normal(k2, (N, D), dtype=jnp.float32)
    linear_w = jax.random.normal(k3, (N, N * D), dtype=jnp.float32) / jnp.sqrt(N * D)
    linear_b = 0.01 * jax.random.normal(k4, (N,), dtype=jnp.float32)

    # one-time weight fold (simulates doing it at model init)
    w_pad, b_pad = prepare_params(linear_w, linear_b, N, D)

    label_feature, logits = hiagm_la_forward(text_feature, label_emb, w_pad, b_pad, N)
    jax.block_until_ready(logits)

    ref_label_feature, ref_logits = ref_forward(text_feature, label_emb, linear_w, linear_b)
    assert logits.shape == (B, N)
    assert label_feature.shape == (N, D)
    assert jnp.allclose(label_feature, ref_label_feature)
    assert jnp.allclose(logits, ref_logits, atol=1e-4, rtol=1e-4)

    print("KERNEL_OK")
</pallas_src>

<mosaic_0001>
module attributes {stable_mosaic.version = 11 : i64} {
  func.func @hiagm_la_kernel(%arg0: i32, %arg1: memref<8x8x32xf32, #tpu.memory_space<vmem>>, %arg2: memref<32x128xf32, #tpu.memory_space<vmem>>, %arg3: memref<1x128xf32, #tpu.memory_space<vmem>>, %arg4: memref<8x128xf32, #tpu.memory_space<vmem>>) attributes {dimension_semantics = [#tpu.dimension_semantics<parallel>], iteration_bounds = array<i64: 2>, scalar_prefetch = 0 : i64, scratch_operands = 0 : i64, tpu.core_type = #tpu.core_type<tc>, window_params = [{transform_indices = @transform_0, window_bounds = array<i64: 8, 8, 32>}, {pipeline_mode = #tpu.pipeline_mode<synchronous>, transform_indices = @transform_1, window_bounds = array<i64: 32, 128>}, {pipeline_mode = #tpu.pipeline_mode<synchronous>, transform_indices = @transform_2, window_bounds = array<i64: 1, 128>}, {transform_indices = @transform_3, window_bounds = array<i64: 8, 128>}]} {
    %c0 = arith.constant 0 : index
    %c0_0 = arith.constant 0 : index
    %c0_1 = arith.constant 0 : index
    %0 = vector.load %arg1[%c0, %c0_0, %c0_1] : memref<8x8x32xf32, #tpu.memory_space<vmem>>, vector<8x8x32xf32>
    %cst = arith.constant dense<0.000000e+00> : vector<8x32xf32>
    %1 = vector.multi_reduction <add>, %0, %cst [1] : vector<8x8x32xf32> to vector<8x32xf32>
    %cst_2 = arith.constant 1.250000e-01 : f32
    %2 = vector.broadcast %cst_2 : f32 to vector<8x32xf32>
    %3 = arith.mulf %1, %2 : vector<8x32xf32>
    %c0_3 = arith.constant 0 : index
    %c0_4 = arith.constant 0 : index
    %4 = vector.load %arg2[%c0_3, %c0_4] : memref<32x128xf32, #tpu.memory_space<vmem>>, vector<32x128xf32>
    %cst_5 = arith.constant dense<0.000000e+00> : vector<8x128xf32>
    %5 = tpu.matmul %3, %4, %cst_5 {dimension_numbers = #tpu.dot_dimension_numbers<[1], [0], [0], [1], [0, 0, 1, 1], [], []>} : vector<8x32xf32>, vector<32x128xf32>, vector<8x128xf32> -> vector<8x128xf32>
    %c0_6 = arith.constant 0 : index
    %c0_7 = arith.constant 0 : index
    %6 = vector.load %arg3[%c0_6, %c0_7] : memref<1x128xf32, #tpu.memory_space<vmem>>, vector<1x128xf32>
    %7 = vector.broadcast %6 : vector<1x128xf32> to vector<8x128xf32>
    %8 = arith.addf %5, %7 : vector<8x128xf32>
    %c0_8 = arith.constant 0 : index
    %c0_9 = arith.constant 0 : index
    %9 = vector.load %arg4[%c0_8, %c0_9] : memref<8x128xf32, #tpu.memory_space<vmem>>, vector<8x128xf32>
    tpu.vector_store %arg4[%c0_8, %c0_9], %8 {strides = array<i32>} : memref<8x128xf32, #tpu.memory_space<vmem>>, vector<8x128xf32>,
    return
  }
  func.func @transform_0(%arg0: i32) -> (i32, i32, i32) {
    %c0_i32 = arith.constant 0 : i32
    %c0_i32_0 = arith.constant 0 : i32
    %c0_i32_1 = arith.constant 0 : i32
    return %arg0, %c0_i32, %c0_i32_0 : i32, i32, i32
  }
  func.func @transform_1(%arg0: i32) -> (i32, i32) {
    %c0_i32 = arith.constant 0 : i32
    %c0_i32_0 = arith.constant 0 : i32
    %c0_i32_1 = arith.constant 0 : i32
    return %c0_i32, %c0_i32_0 : i32, i32
  }
  func.func @transform_2(%arg0: i32) -> (i32, i32) {
    %c0_i32 = arith.constant 0 : i32
    %c0_i32_0 = arith.constant 0 : i32
    %c0_i32_1 = arith.constant 0 : i32
    return %c0_i32, %c0_i32_0 : i32, i32
  }
  func.func @transform_3(%arg0: i32) -> (i32, i32) {
    %c0_i32 = arith.constant 0 : i32
    %c0_i32_0 = arith.constant 0 : i32
    return %arg0, %c0_i32 : i32, i32
  }
}

</mosaic_0001>

<bundles_post_ra>
// kernel: tpu_custom_call.1
= control target key start
LH: loop header
LB: loop body
LE: loop exit
PB: predicated region body
PF: predicated region fallthrough
CT: control target
= control target key end

     0   :  { %8 = vsyncpa [#allocation3], 0  ;;  %s960_s0 = inlined_call_operand.hbm [shape: f32[16,8,32], index: 0, kind: input, shape index: {}]   ;;  %s961_s1 = inlined_call_operand.hbm [shape: f32[32,128], index: 1, kind: input, shape index: {}]   ;;  %s962_s2 = inlined_call_operand.vmem [shape: f32[1,128], index: 2, kind: input, shape index: {}]   ;;  %s963_s3 = inlined_call_operand.hbm [shape: f32[16,128], index: 3, kind: output, shape index: {}]  }
   0x1   :  { %10 = vsyncpa [#allocation3 + $0x1], 0 }
   0x2   :  { %11 = vsyncpa [#allocation6], 0 }
   0x3   :  { %12 = vsyncpa [#allocation4], 0 }
   0x4   :  { %14 = vsyncpa [#allocation4 + $0x1], 0  ;;  %s738_s12 = smov 0   ;;  %s740_s13 = smov 0  }
   0x5   :  { %s742_s14 = smov 0   ;;  %s744_s15 = smov 0  }
   0x6 LB: > { %s759_s16 = sadd.s32 4294967295, %s708_s15   ;;  %s478_s17 = sadd.s32 4294967294, %s708_s15   ;;  %s708_s15 = sphi %s744_s15, %s983_s15   ;;  %s704_s14 = sphi %s742_s14, %s982_s14   ;;  %s700_s13 = sphi %s740_s13, %s981_s13   ;;  %s696_s12 = sphi %s738_s12, %s980_s12  }
   0x7   : > { %p40_p0 = scmp.ne.s32.totalorder %s700_s13, %s696_s12  ;;  %p964_p1 = scmp.eq.s32.totalorder %s759_s16, 0 }
   0x8   : > { %p112_p3 = scmp.eq.s32.totalorder %s478_s17, 1  ;;  %p479_p5 = scmp.ge.s32.totalorder %s708_s15, 1 }
   0x9   : > { %p768_p4 = por %p964_p1, %p40_p0  ;;  %p119_p7 = scmp.lt.s32.totalorder %s708_s15, 3 }
   0xa   : > { %p773_p6 = por %p112_p3, %p40_p0  ;;  %s710_s21 = smov [#allocation5]  }
   0xb   : > { %s967_s18 = scalar_select %p768_p4, 1, 0 }
   0xc   : > { %s968_s19 = scalar_select %p773_p6, 1, 0 }
   0xd   : > { %p778_p8 = pnand %p479_p5, %p119_p7  ;;  %s131_s22 = sshll.u32 %s710_s21, 4  ;;  %s782_s22 = int_to_ptr.vmem [resolvable:$true] %s131_s22 }
   0xe   : > { %s794_s24 = sadd.s32 1, %s708_s15   ;;  %s27_s25 = sadd.s32 1, %s704_s14 }
   0xf   : > { %s969_s20 = scalar_select %p778_p8, 1, 0 }
  0x10   : > { %p526_p9 = pneg %p778_p8  ;;  %s24_s26 = ssub.s32 %s708_s15, %s794_s24 }
  0x11   : > { %s580_s29 = scalar_lea.hbm %s961_s1, 512 }
  0x12   : > { %p789_p11 = pnand %p526_p9, %p964_p1  ;;  %p581_p12 = scmp.ne.s32.totalorder %s961_s1, %s580_s29 }
  0x13   : > { %p587_p5 = scmp.lt.u32.totalorder %s580_s29, %s961_s1 }
  0x14   : > { %p582_p13 = pneg %p789_p11 }
  0x16   : > { %p583_p0 = pnand %p582_p13, %p581_p12 }
  0x18   : > { %p584_p3 = pneg %p583_p0 }
  0x1a   : > { %p589_p7 = pnand %p587_p5, %p584_p3 }
  0x1c   : > { %592 = shalt.err (!%p589_p7)
}
  0x1d   : > { %s593_s7 = scalar_lea.vmem %s782_s22, 512  ;;  %p601_p2 = scmp.lt.s32.totalorder %s782_s22, %s782_s22 }
  0x1e   : > { %p594_p9 = scmp.ne.s32.totalorder %s782_s22, %s593_s7  ;;  %p602_p6 = scmp.lt.s32.totalorder %s593_s7, %s593_s7 }
  0x20   : > { %p596_p10 = pnand %p594_p9, %p582_p13  ;;  %p603_p4 = por %p602_p6, %p601_p2 }
  0x22   : > { %p597_p1 = pneg %p596_p10 }
  0x24   : > { %p604_p8 = pnand %p603_p4, %p597_p1 }
  0x26   : > { %607 = shalt.err (!%p604_p8)
}
  0x27   : > { %s711_s8 = smov 128   ;;  %s712_s9 = smov 8  }
  0x28   : > { %529 = dma.hbm_to_vmem [thread:$0]  (!%p789_p11), %s961_s1, 512, %s782_s22, [#allocation6], %s711_s8, %s711_s8, %s712_s9  }
  0x29   : > { %p25_p1 = scmp.eq.s32.totalorder %s24_s26, 0  ;;  %p34_p2 = scmp.ne.s32.totalorder %s704_s14, %s700_s13 }
  0x2a   : > { %p35_p4 = scmp.eq.s32.totalorder %s708_s15, 0  ;;  %p539_p6 = scmp.lt.s32.totalorder %s708_s15, 2 }
  0x2b   : > { %s828_s17 = scalar_select %p25_p1, %s704_s14, %s27_s25  }
  0x2c   : > { %p36_p8 = por %p35_p4, %p34_p2  ;;  %p971_p10 = scmp.eq.s32.totalorder %s759_s16, 1 }
  0x2d   : > { %s148_s23 = sand.u32 1, %s704_s14   ;;  %s495_s27 = sshll.u32 %s708_s15, 10 }
  0x2e   : > { %p832_p12 = por %p971_p10, %p34_p2  ;;  %s482_s28 = sshll.u32 %s148_s23, 6 }
  0x2f   : > { %s841_s4 = scalar_lea.hbm %s960_s0, %s495_s27  ;;  %s152_s22 = scalar_lea.vmem [#allocation2], %s482_s28 }
  0x30   : > { %s159_s25 = sshll.u32 %s152_s22, 4  ;;  %p843_p11 = pnand %p539_p6, %p36_p8  ;;  %s847_s25 = int_to_ptr.vmem [resolvable:$true] %s159_s25 }
  0x31   : > { %s849_s5 = scalar_lea.sflag [#allocation3], %s148_s23  ;;  %s608_s6 = scalar_lea.hbm %s841_s4, 1024 }
  0x32   : > { %p609_p13 = scmp.ne.s32.totalorder %s841_s4, %s608_s6  ;;  %p610_p0 = pneg %p843_p11 }
  0x33   : > { %s613_s11 = scalar_lea.hbm %s960_s0, 2048  ;;  %p614_p7 = scmp.lt.u32.totalorder %s841_s4, %s960_s0 }
  0x34   : > { %p611_p3 = pnand %p610_p0, %p609_p13  ;;  %p615_p9 = scmp.lt.u32.totalorder %s613_s11, %s608_s6 }
  0x35   : > { %p617_p2 = scmp.lt.u32.totalorder %s608_s6, %s841_s4 }
  0x36   : > { %p612_p5 = pneg %p611_p3  ;;  %p616_p1 = por %p615_p9, %p614_p7 }
  0x38   : > { %p618_p4 = por %p617_p2, %p616_p1 }
  0x3a   : > { %p619_p6 = pnand %p618_p4, %p612_p5 }
  0x3c   : > { %622 = shalt.err (!%p619_p6)
}
  0x3d   : > { %s623_s23 = scalar_lea.vmem %s847_s25, 1024  ;;  %s713_s29 = smov [#allocation2]  }
  0x3e   : > { %p624_p8 = scmp.ne.s32.totalorder %s847_s25, %s623_s23  ;;  %s628_s30 = sshll.u32 %s713_s29, 4  ;;  %s629_s30 = int_to_ptr.vmem [resolvable:$false] %s628_s30 }
  0x3f   : > { %s630_s22 = scalar_lea.vmem %s629_s30, 2048  ;;  %p631_p3 = scmp.lt.s32.totalorder %s847_s25, %s629_s30 }
  0x40   : > { %p626_p10 = pnand %p624_p8, %p610_p0  ;;  %p632_p7 = scmp.lt.s32.totalorder %s630_s22, %s623_s23 }
  0x42   : > { %p627_p13 = pneg %p626_p10  ;;  %p633_p9 = por %p632_p7, %p631_p3 }
  0x44   : > { %p634_p1 = pnand %p633_p9, %p627_p13 }
  0x46   : > { %637 = shalt.err (!%p634_p1)
}
  0x47   : > { %533 = dma.hbm_to_vmem [thread:$0]  (!%p843_p11), %s841_s4, 1024, %s847_s25, %s849_s5, %s711_s8, %s711_s8, %s712_s9  }
  0x48   : > { %p974_p0 = scmp.ne.s32.totalorder %s969_s20, 0 }
  0x49   : > { %s883_s6 = sand.u32 (!%p974_p0), 1, %s700_s13   ;;  %p975_p5 = scmp.ne.s32.totalorder (!%p974_p0), %s967_s18, 0 }
  0x4a   : > { %171 = sbr.rel (%p974_p0) target bundleno = 338 (0x152), region = 32  ;;  %s486_s7 = sshll.u32 (!%p974_p0), %s883_s6, 6 }
  0x4b   : > { %s174_s10 = scalar_lea.sflag (!%p974_p0), [#allocation3], %s883_s6  ;;  %s177_s11 = scalar_lea.vmem (!%p974_p0), [#allocation2], %s486_s7 }
  0x51   : > { %683 = dma.done.wait (%p975_p5), %s174_s10, 1024  }
  0x52   : > { %685 = vsyncadd (%p975_p5), %s174_s10, 4294966272  ;;  %p976_p2 = scmp.eq.s32.totalorder %s759_s16, 0 }
  0x54   : > { %687 = dma.done.wait (%p976_p2), [#allocation6], 512   ;;  %p977_p11 = pmov %p976_p2 }
  0x55   : > { %v714_v0 = vmov 0.0|0.0   ;;  %vm715_vm0 = vmmov 0   ;;  %v716_v1 = vmov 0.0   ;;  %vm213_vm1 = vcmask 261120   ;;  %v278_v2 = vld [vmem:[#allocation5] sm:$0xff]  ;;  %v279_v3 = vld [vmem:[#allocation5 + $0x8] sm:$0xff] }
  0x56   : > { %689 = vsyncadd (%p977_p11), [#allocation6], 4294966784  ;;  %512 = vmatprep.subr.bf16.mxu0 %v714_v0  ;;  %509 = vmatprep.mubr.msk.f32.mxu0 %vm715_vm0, %v716_v1  ;;  %v280_v4 = vld [vmem:[#allocation5 + $0x10] sm:$0xff]  ;;  %v513_v5 = vpack.c.bf16 %v279_v3, %v278_v2  ;;  %v281_v6 = vld [vmem:[#allocation5 + $0x18] sm:$0xff]  ;;  %vm297_vm2 = vcmask 1041409   ;;  %vm299_vm3 = vcmask 1042434  }
  0x57   : > { %v205_v7 = vld [vmem:[%s177_s11] sm:$0xff]  ;;  %v206_v8 = vld [vmem:[%s177_s11 + $0x8] sm:$0xff]  ;;  %v207_v9 = vld [vmem:[%s177_s11 + $0x10] sm:$0xff]  ;;  %v516_v14 = vpack.c.bf16 %v281_v6, %v280_v4  ;;  %vm301_vm4 = vcmask 1043459   ;;  %vm303_vm5 = vcmask 1044484   ;;  %vm305_vm6 = vcmask 1045509  }
  0x58   : > { %v208_v10 = vld [vmem:[%s177_s11 + $0x18] sm:$0xff]  ;;  %v209_v11 = vld [vmem:[%s177_s11 + $0x20] sm:$0xff]  ;;  %v214_v12 = vsel %vm213_vm1, %v205_v7, 0.0  ;;  %v221_v13 = vsel %vm213_vm1, %v206_v8, 0.0  ;;  %514 = vmatpush3.bf16.msra.mxu0 %v513_v5  ;;  %v210_v15 = vld [vmem:[%s177_s11 + $0x28] sm:$0xff]  ;;  %v228_v20 = vsel %vm213_vm1, %v207_v9, 0.0 }
  0x59   : > { %v211_v16 = vld [vmem:[%s177_s11 + $0x30] sm:$0xff]  ;;  %v212_v17 = vld [vmem:[%s177_s11 + $0x38] sm:$0xff]  ;;  %v215_v18 = vrot.slane %v214_v12, 4  ;;  %v222_v19 = vrot.slane %v221_v13, 4  ;;  %515 = vmatprep.subr.bf16.mxu0 %v714_v0  ;;  %v229_v21 = vrot.slane %v228_v20, 4  ;;  %v235_v22 = vsel %vm213_vm1, %v208_v10, 0.0 }
  0x5a   : > { %v242_v23 = vsel %vm213_vm1, %v209_v11, 0.0  ;;  %v249_v24 = vsel %vm213_vm1, %v210_v15, 0.0  ;;  %v236_v27 = vrot.slane %v235_v22, 4  ;;  %v256_v31 = vsel %vm213_vm1, %v211_v16, 0.0  ;;  %s488_s18 = sshll.u32 %s883_s6, 3  ;;  %s492_s9 = sshll.u32 %s759_s16, 7 }
  0x5b   : > { %v216_v25 = vadd.f32 %v215_v18, %v214_v12  ;;  %v223_v26 = vadd.f32 %v222_v19, %v221_v13  ;;  %v243_v28 = vrot.slane %v242_v23, 4  ;;  %v230_v29 = vadd.f32 %v229_v21, %v228_v20  ;;  %s203_s4 = scalar_lea.vmem [#allocation7], %s488_s18  ;;  %s916_s27 = scalar_lea.hbm %s963_s3, %s492_s9 }
  0x5c   : > { %v250_v30 = vrot.slane %v249_v24, 4  ;;  %v263_v32 = vsel %vm213_vm1, %v212_v17, 0.0  ;;  %517 = vmatpush3.bf16.msra.mxu0 %v516_v14  ;;  %v237_v35 = vadd.f32 %v236_v27, %v235_v22  ;;  %v257_v39 = vrot.slane %v256_v31, 4  ;;  %s398_s25 = sshll.u32 %s203_s4, 4  ;;  %s385_s28 = scalar_lea.sflag [#allocation4], %s883_s6  ;;  %s918_s25 = int_to_ptr.vmem [resolvable:$true] %s398_s25 }
  0x5d   : > { %v217_v33 = vrot.slane %v216_v25, 2  ;;  %v224_v34 = vrot.slane %v223_v26, 2  ;;  %v244_v36 = vadd.f32 %v243_v28, %v242_v23  ;;  %v231_v37 = vrot.slane %v230_v29, 2  ;;  %v489_v23 = vld [vmem:[%s962_s2] ss:$0 sm:$0xff]  ;;  %s638_s23 = scalar_lea.vmem %s918_s25, 128 }
  0x5e   : > { %v251_v38 = vadd.f32 %v250_v30, %v249_v24  ;;  %v264_v40 = vrot.slane %v263_v32, 4  ;;  %v238_v43 = vrot.slane %v237_v35, 2  ;;  %v258_v47 = vadd.f32 %v257_v39, %v256_v31  ;;  %p639_p4 = scmp.ne.s32.totalorder %s918_s25, %s638_s23  ;;  %s717_s16 = smov [#allocation7]  }
  0x5f   : > { %v218_v41 = vadd.f32 %v217_v33, %v216_v25  ;;  %v225_v42 = vadd.f32 %v224_v34, %v223_v26  ;;  %v245_v44 = vrot.slane %v244_v36, 2  ;;  %v232_v45 = vadd.f32 %v231_v37, %v230_v29  ;;  %s642_s29 = sshll.u32 %s717_s16, 4  ;;  %s643_s29 = int_to_ptr.vmem [resolvable:$false] %s642_s29 }
  0x60   : > { %v252_v46 = vrot.slane %v251_v38, 2  ;;  %v265_v48 = vadd.f32 %v264_v40, %v263_v32  ;;  %v239_v51 = vadd.f32 %v238_v43, %v237_v35  ;;  %v259_v55 = vrot.slane %v258_v47, 2  ;;  %p640_p6 = pnand %p639_p4, %p832_p12  ;;  %s644_s30 = scalar_lea.vmem %s643_s29, 256 }
  0x61   : > { %v219_v49 = vrot.slane %v218_v41, 1  ;;  %v226_v50 = vrot.slane %v225_v42, 1  ;;  %v246_v52 = vadd.f32 %v245_v44, %v244_v36  ;;  %v233_v53 = vrot.slane %v232_v45, 1  ;;  %p645_p10 = scmp.lt.s32.totalorder %s918_s25, %s643_s29  ;;  %p646_p13 = scmp.lt.s32.totalorder %s644_s30, %s638_s23 }
  0x62   : > { %v253_v54 = vadd.f32 %v252_v46, %v251_v38  ;;  %v266_v56 = vrot.slane %v265_v48, 2  ;;  %v240_v59 = vrot.slane %v239_v51, 1  ;;  %v260_v63 = vadd.f32 %v259_v55, %v258_v47  ;;  %p641_p8 = pneg %p640_p6 }
  0x63   : > { %v220_v57 = vadd.f32 %v219_v49, %v218_v41  ;;  %v227_v58 = vadd.f32 %v226_v50, %v225_v42  ;;  %v247_v60 = vrot.slane %v246_v52, 1  ;;  %v234_v61 = vadd.f32 %v233_v53, %v232_v45  ;;  %p647_p3 = por %p646_p13, %p645_p10 }
  0x64   : > { %v254_v62 = vrot.slane %v253_v54, 1  ;;  %v267_v0 = vadd.f32 %v266_v56, %v265_v48  ;;  %v241_v1 = vadd.f32 %v240_v59, %v239_v51  ;;  %v261_v6 = vrot.slane %v260_v63, 1 }
  0x65   : > { %v248_v2 = vadd.f32 %v247_v60, %v246_v52  ;;  %v270_v3 = vmul.f32 0.125, %v220_v57  ;;  %v271_v4 = vmul.f32 0.125, %v227_v58  ;;  %v272_v8 = vmul.f32 0.125, %v234_v61  ;;  %p648_p7 = pnand %p647_p3, %p641_p8 }
  0x66   : > { %v255_v5 = vadd.f32 %v254_v62, %v253_v54  ;;  %v268_v7 = vrot.slane %v267_v0, 1  ;;  %v273_v9 = vmul.f32 0.125, %v241_v1  ;;  %v262_v12 = vadd.f32 %v261_v6, %v260_v63 }
  0x67   : > { %v274_v10 = vmul.f32 0.125, %v248_v2  ;;  %v298_v11 = vsel %vm297_vm2, %v271_v4, %v270_v3  ;;  %vm307_vm7 = vcmask 1046534   ;;  %vm309_vm8 = vcmask 1047559  }
  0x68   : > { %v269_v13 = vadd.f32 %v268_v7, %v267_v0  ;;  %v275_v14 = vmul.f32 0.125, %v255_v5  ;;  %v300_v15 = vsel %vm299_vm3, %v272_v8, %v298_v11  ;;  %v276_v17 = vmul.f32 0.125, %v262_v12 }
  0x69   : > { %v302_v16 = vsel %vm301_vm4, %v273_v9, %v300_v15 }
  0x6a   : > { %v277_v18 = vmul.f32 0.125, %v269_v13  ;;  %v304_v19 = vsel %vm303_vm5, %v274_v10, %v302_v16 }
  0x6b   : > { %v306_v20 = vsel %vm305_vm6, %v275_v14, %v304_v19 }
  0x6c   : > { %v308_v21 = vsel %vm307_vm7, %v276_v17, %v306_v20 }
  0x6d   : > { %v310_v22 = vsel %vm309_vm8, %v277_v18, %v308_v21 }
  0x6e   : > { %510 = vmatmul.mubr.msk.f32.vlgmr.msra.gmra.mrb[0].mxu0 %vm213_vm1, %v310_v22 }
 0x141   : > { %v379_v24 = vpop.f32.mrb[0].mxu0 }
 0x142   : > { %v380_v25 = vadd.f32 %v489_v23, %v379_v24  ;;  %v511_v26 = vpop.f32.mrb[1].mxu0 }
 0x144   : > { %383 = vst [vmem:[%s203_s4] sm:$0xff] %v380_v25 }
 0x145   : > { %651 = shalt.err (!%p648_p7)
}
 0x146   : > { %s652_s22 = scalar_lea.hbm %s916_s27, 128  ;;  %s656_s10 = scalar_lea.hbm %s963_s3, 256 }
 0x147   : > { %p653_p9 = scmp.ne.s32.totalorder %s916_s27, %s652_s22  ;;  %p657_p5 = scmp.lt.u32.totalorder %s916_s27, %s963_s3 }
 0x148   : > { %p658_p2 = scmp.lt.u32.totalorder %s656_s10, %s652_s22  ;;  %p660_p4 = scmp.lt.u32.totalorder %s652_s22, %s916_s27 }
 0x149   : > { %p654_p1 = pnand %p653_p9, %p832_p12 }
 0x14a   : > { %p659_p11 = por %p658_p2, %p657_p5 }
 0x14b   : > { %p655_p0 = pneg %p654_p1 }
 0x14c   : > { %p661_p6 = por %p660_p4, %p659_p11 }
 0x14e   : > { %p662_p8 = pnand %p661_p6, %p655_p0 }
 0x150   : > { %665 = shalt.err (!%p662_p8)
}
 0x151   : > { %524 = dma.vmem_to_hbm [thread:$0]  (%p832_p12), %s918_s25, 128, %s916_s27, %s385_s28  }
 0x152 PF: > { %s410_s20 = sand.u32 1, %s696_s12   ;;  %p978_p10 = scmp.ne.s32.totalorder %s968_s19, 0 }
 0x153   : > { %p979_p13 = scmp.ge.s32.totalorder %s708_s15, 2  ;;  %s411_s8 = scalar_lea.sflag [#allocation4], %s410_s20 }
 0x155   : > { %p535_p3 = pnand %p979_p13, %p978_p10 }
 0x157   : > { %691 = dma.done.wait (!%p535_p3), %s411_s8, 128  }
 0x158   : > { %693 = vsyncadd (!%p535_p3), %s411_s8, 4294967168  ;;  %p17_p7 = scmp.ge.s32.totalorder %s794_s24, 4   ;;  %s980_s12 = smov %s700_s13 }
 0x159   : > { %s981_s13 = smov %s704_s14  ;;  %s982_s14 = smov %s828_s17 }
 0x15a   : > { %s983_s15 = smov %s794_s24  ;;  %19 = sbr.rel (!%p17_p7) target bundleno = 6 (0x6), region = 81 }
 0x161   :  { %416 = vsyncpa [#allocation3], 1 }
 0x162   :  { %418 = vsyncpa [#allocation3 + $0x1], 1 }
 0x163   :  { %419 = vsyncpa [#allocation6], 1 }
 0x164   :  { %420 = vsyncpa [#allocation4], 1 }
 0x165   :  { %422 = vsyncpa [#allocation4 + $0x1], 1 }

</bundles_post_ra>
